<compile_context>
chip_gen: v7x
topology: tpu7x:2x2x1
jax: 0.10.0
libtpu: 0.0.40
codegen_flags: <defaults>
</compile_context>

<pallas_src>
import functools

import jax
import jax.numpy as jnp
from jax.experimental import pallas as pl
from jax.experimental.pallas import tpu as pltpu


def _round_up(x, m):
    return (x + m - 1) // m * m


def _cdiv(a, b):
    return (a + b - 1) // b


def _vmem_capacity_bytes():
    try:
        return int(pltpu.get_tpu_info().vmem_capacity_bytes)
    except Exception:
        return 64 * 1024 * 1024  # conservative fallback (v7x per-TensorCore VMEM)


def _pick_tm(M, H128, P, C, OC, T, in_isz, out_isz, n_batch, vmem_cap):
    """Largest lane tile tm (multiple of the halo size H128) whose double-buffered
    working set fits a conservative share of this generation's VMEM, capped at
    what the problem needs (and keeping >=2 grid steps when N==1 for v7x)."""
    budget = int(0.55 * vmem_cap)
    c_v = _round_up(C, 8)                 # VMEM sublane padding
    oc_v = _round_up(OC, 8)
    fixed = 2 * P * c_v * H128 * in_isz                       # halo block (x2 buffers)
    fixed += 2 * T * oc_v * _round_up(C, 128) * in_isz        # resident per-tap weights
    max_useful = _round_up(M, H128)
    if n_batch == 1 and max_useful > H128:
        max_useful = _round_up(_cdiv(M, 2), H128)             # >=2 steps -> both TCs busy
    tm = H128
    while True:
        cand = tm + H128
        if cand > max_useful or cand > 8192:
            break
        per_tile = (2 * P * c_v * cand * in_isz               # main input block (x2)
                    + 2 * oc_v * cand * out_isz               # output block (x2)
                    + P * c_v * (cand + H128) * 4             # per-phase contiguous window
                    + oc_v * cand * 4)                        # f32 accumulator
        if fixed + per_tile > budget:
            break
        tm = cand
    return tm


# ----------------------------- Pallas kernel ------------------------------ #
def _build_kernel(taps, tm, OC):
    """taps: static list of (phase_index, lane_offset) per (kh, kw) tap."""

    def kernel(xa_ref, xb_ref, w_ref, b_ref, o_ref):
        # xa_ref: (P, C, tm)    main lane window  [j*tm, j*tm + tm)
        # xb_ref: (P, C, H128)  halo lane window  [j*tm + tm, j*tm + tm + H128)
        # w_ref : (T, OC, C)    per-tap weight slabs (resident)
        # b_ref : (OC, 1)       f32 bias column
        # o_ref : (OC, tm)      lane-dense output tile
        acc = jnp.zeros((OC, tm), jnp.float32) + b_ref[...]
        window = {}
        for t_idx, (ph, off) in enumerate(taps):
            if ph not in window:
                # One contiguous (C, tm + H128) window per stride phase; every
                # tap below is a purely static lane slice of it.
                window[ph] = jnp.concatenate([xa_ref[ph], xb_ref[ph]], axis=-1)
            xs = window[ph][:, off:off + tm]                  # (C, tm), static slice
            acc = acc + jnp.dot(w_ref[t_idx], xs,
                                preferred_element_type=jnp.float32)
        o_ref[...] = acc.astype(o_ref.dtype)

    return kernel


def _conv_shift_gemm(xph, w_taps, bias_col, taps, *, tm, H128, Mp, out_dtype):
    """xph: (N, P, C, Lp) phase-split flattened padded input -> (N, OC, Mp)."""
    N, P, C, Lp = xph.shape
    T, OC, _ = w_taps.shape
    assert tm % H128 == 0 and Mp % tm == 0 and Lp >= Mp + H128
    grid = (N, Mp // tm)
    vmem_cap = _vmem_capacity_bytes()
    in_isz = xph.dtype.itemsize
    out_isz = jnp.dtype(out_dtype).itemsize

    cost = pl.CostEstimate(
        flops=2 * N * Mp * OC * C * T,
        transcendentals=0,
        bytes_accessed=(N * (Mp // tm) * P * C * (tm + H128) * in_isz  # main + halo reads
                        + T * OC * C * w_taps.dtype.itemsize
                        + OC * 4
                        + N * OC * Mp * out_isz),
    )

    kernel = _build_kernel(taps, tm, OC)
    return pl.pallas_call(
        kernel,
        out_shape=jax.ShapeDtypeStruct((N, OC, Mp), out_dtype),
        grid_spec=pltpu.PrefetchScalarGridSpec(
            num_scalar_prefetch=0,
            grid=grid,
            in_specs=[
                # main lane-dense tile of the phase-split input
                pl.BlockSpec((None, P, C, tm), lambda n, j: (n, 0, 0, j)),
                # small 128-aligned halo tile right after the main tile
                pl.BlockSpec((None, P, C, H128),
                             lambda n, j: (n, 0, 0, (j + 1) * (tm // H128))),
                # resident per-tap weights and bias (constant index_map)
                # TODO(synk): add an OC grid axis (128/256-blocked) for very wide layers.
                pl.BlockSpec((T, OC, C), lambda n, j: (0, 0, 0)),
                pl.BlockSpec((OC, 1), lambda n, j: (0, 0)),
            ],
            out_specs=pl.BlockSpec((None, OC, tm), lambda n, j: (n, 0, j)),
        ),
        compiler_params=pltpu.CompilerParams(
            dimension_semantics=("parallel", "parallel"),
            vmem_limit_bytes=int(0.85 * vmem_cap),
        ),
        cost_estimate=cost,
    )(xph, xph, w_taps, bias_col)


# ------------------------------ Conv2d wrapper ----------------------------- #
@functools.partial(jax.jit, static_argnames=("stride", "padding", "compute_dtype"))
def conv2d_forward(x, weight, bias=None, *, stride=1, padding=1, compute_dtype=None):
    """NCHW conv2d forward matching torch.nn.Conv2d (groups=1, dilation=1).

    compute_dtype: optionally cast the activation/weight streams (bf16 on
    v5e/v6e, fp8 on v7x) before any padding/reshaping; accumulation stays f32
    and the output keeps x.dtype.  Default None == exact f32 semantics.
    """
    # TODO(synk): groups > 1 and dilation > 1 (module defaults are 1) are not implemented.
    N, C, H, W = x.shape
    OC, Cw, KH, KW = weight.shape
    assert Cw == C
    s = int(stride)
    p = int(padding)

    if compute_dtype is not None:
        x_in = x.astype(compute_dtype)       # cast BEFORE padding: single small copy
        w_in = weight.astype(compute_dtype)
    else:
        x_in, w_in = x, weight

    Hp, Wp = H + 2 * p, W + 2 * p
    OH = (Hp - KH) // s + 1
    OW = (Wp - KW) // s + 1
    Hps, Wps = _cdiv(Hp, s), _cdiv(Wp, s)    # per-phase spatial grid
    P = s * s
    T = KH * KW

    # Static tap table: tap (kh, kw) reads stride phase (kh % s, kw % s) at a
    # constant lane offset (kh // s) * Wps + (kw // s) from the output's base lane.
    taps = [((kh % s) * s + (kw % s), (kh // s) * Wps + (kw // s))
            for kh in range(KH) for kw in range(KW)]
    offmax = max(off for _, off in taps)
    H128 = max(128, _round_up(offmax, 128))  # halo size, 128-aligned

    M = OH * Wps                             # "padded-width" output lane length
    in_isz = jnp.dtype(x_in.dtype).itemsize
    out_isz = jnp.dtype(x.dtype).itemsize
    tm = _pick_tm(M, H128, P, C, OC, T, in_isz, out_isz, N, _vmem_capacity_bytes())
    Mp = _round_up(M, tm)
    Lp = max(Mp + H128, _round_up(Hps * Wps, 128))

    # Zero-pad for conv padding, split into s*s stride phases (same total bytes
    # as the input -- no KH*KW duplication in HBM), flatten each phase's grid
    # onto the lane axis and zero-pad to Lp lanes.
    xpad = jnp.pad(x_in, ((0, 0), (0, 0), (p, p), (p, p)))
    xbig = jnp.pad(xpad, ((0, 0), (0, 0), (0, Hps * s - Hp), (0, Wps * s - Wp)))
    xph = (xbig.reshape(N, C, Hps, s, Wps, s)
               .transpose(0, 3, 5, 1, 2, 4)            # (N, rh, rw, C, Hps, Wps)
               .reshape(N, P, C, Hps * Wps))
    xph = jnp.pad(xph, ((0, 0), (0, 0), (0, 0), (0, Lp - Hps * Wps)))

    # Per-tap weight slabs (KH*KW, OC, C), tap order matching `taps`.
    w_taps = w_in.transpose(2, 3, 0, 1).reshape(T, OC, C)
    if bias is None:
        bias_col = jnp.zeros((OC, 1), jnp.float32)
    else:
        bias_col = bias.reshape(OC, 1).astype(jnp.float32)

    out_p = _conv_shift_gemm(xph, w_taps, bias_col, taps,
                             tm=tm, H128=H128, Mp=Mp, out_dtype=x.dtype)
    # (N, OC, Mp) -> crop garbage / padded lanes -> NCHW.
    return out_p[:, :, :OH * Wps].reshape(N, OC, OH, Wps)[:, :, :, :OW]


# ---------------------------------- main ----------------------------------- #
if __name__ == "__main__":
    # Conv2d(in_channels=4, out_channels=8, kernel_size=3, stride=1, padding=1)
    N, C, H, W = 2, 4, 16, 16
    OC, KH, KW = 8, 3, 3

    key = jax.random.PRNGKey(0)
    kx, kw_, kb = jax.random.split(key, 3)
    x = jax.random.normal(kx, (N, C, H, W), dtype=jnp.float32)
    fan_in = C * KH * KW
    bound = 1.0 / (fan_in ** 0.5)
    weight = jax.random.uniform(kw_, (OC, C, KH, KW), jnp.float32, -bound, bound)
    bias = jax.random.uniform(kb, (OC,), jnp.float32, -bound, bound)

    # stride=1, padding=1 (the module's typical configuration)
    y = conv2d_forward(x, weight, bias, stride=1, padding=1)
    jax.block_until_ready(y)
    y_ref = jax.lax.conv_general_dilated(
        x, weight, window_strides=(1, 1), padding=((1, 1), (1, 1)),
        dimension_numbers=("NCHW", "OIHW", "NCHW"),
    ) + bias.reshape(1, OC, 1, 1)
    assert y.shape == (N, OC, H, W)
    assert float(jnp.max(jnp.abs(y - y_ref))) < 1e-4

    # stride=2 path (phase-decomposed) sanity check
    y2 = conv2d_forward(x, weight, bias, stride=2, padding=1)
    jax.block_until_ready(y2)
    y2_ref = jax.lax.conv_general_dilated(
        x, weight, window_strides=(2, 2), padding=((1, 1), (1, 1)),
        dimension_numbers=("NCHW", "OIHW", "NCHW"),
    ) + bias.reshape(1, OC, 1, 1)
    assert y2.shape == y2_ref.shape
    assert float(jnp.max(jnp.abs(y2 - y2_ref))) < 1e-4

    print("KERNEL_OK")
</pallas_src>

<mosaic_0001>
module attributes {stable_mosaic.version = 11 : i64} {
  func.func @kernel(%arg0: i32, %arg1: i32, %arg2: memref<1x1x4x384xf32, #tpu.memory_space<vmem>>, %arg3: memref<1x1x4x128xf32, #tpu.memory_space<vmem>>, %arg4: memref<9x8x4xf32, #tpu.memory_space<vmem>>, %arg5: memref<8x1xf32, #tpu.memory_space<vmem>>, %arg6: memref<1x8x384xf32, #tpu.memory_space<vmem>>) attributes {dimension_semantics = [#tpu.dimension_semantics<parallel>, #tpu.dimension_semantics<parallel>], iteration_bounds = array<i64: 2, 1>, scalar_prefetch = 0 : i64, scratch_operands = 0 : i64, tpu.core_type = #tpu.core_type<tc>, window_params = [{transform_indices = @transform_0, window_bounds = array<i64: 1, 1, 4, 384>}, {transform_indices = @transform_1, window_bounds = array<i64: 1, 1, 4, 128>}, {pipeline_mode = #tpu.pipeline_mode<synchronous>, transform_indices = @transform_2, window_bounds = array<i64: 9, 8, 4>}, {pipeline_mode = #tpu.pipeline_mode<synchronous>, transform_indices = @transform_3, window_bounds = array<i64: 8, 1>}, {transform_indices = @transform_4, window_bounds = array<i64: 1, 8, 384>}]} {
    %cst = arith.constant 0.000000e+00 : f32
    %0 = vector.broadcast %cst : f32 to vector<8x384xf32>
    %c0 = arith.constant 0 : index
    %c0_0 = arith.constant 0 : index
    %1 = vector.load %arg5[%c0, %c0_0] : memref<8x1xf32, #tpu.memory_space<vmem>>, vector<8x1xf32>
    %2 = vector.broadcast %1 : vector<8x1xf32> to vector<8x384xf32>
    %3 = arith.addf %0, %2 : vector<8x384xf32>
    %c0_1 = arith.constant 0 : index
    %c0_2 = arith.constant 0 : index
    %c0_3 = arith.constant 0 : index
    %c0_4 = arith.constant 0 : index
    %4 = vector.load %arg2[%c0_1, %c0_2, %c0_3, %c0_4] : memref<1x1x4x384xf32, #tpu.memory_space<vmem>>, vector<1x1x4x384xf32>
    %5 = vector.shape_cast %4 : vector<1x1x4x384xf32> to vector<4x384xf32>
    %c0_5 = arith.constant 0 : index
    %c0_6 = arith.constant 0 : index
    %c0_7 = arith.constant 0 : index
    %c0_8 = arith.constant 0 : index
    %6 = vector.load %arg3[%c0_5, %c0_6, %c0_7, %c0_8] : memref<1x1x4x128xf32, #tpu.memory_space<vmem>>, vector<1x1x4x128xf32>
    %7 = vector.shape_cast %6 : vector<1x1x4x128xf32> to vector<4x128xf32>
    %8 = tpu.concatenate %5, %7 in 1 : vector<4x384xf32>, vector<4x128xf32> -> vector<4x512xf32>
    %9 = vector.extract_strided_slice %8 {offsets = [0, 0], sizes = [4, 384], strides = [1, 1]} : vector<4x512xf32> to vector<4x384xf32>
    %c0_9 = arith.constant 0 : index
    %c0_10 = arith.constant 0 : index
    %c0_11 = arith.constant 0 : index
    %10 = vector.load %arg4[%c0_9, %c0_10, %c0_11] : memref<9x8x4xf32, #tpu.memory_space<vmem>>, vector<1x8x4xf32>
    %11 = vector.shape_cast %10 : vector<1x8x4xf32> to vector<8x4xf32>
    %cst_12 = arith.constant dense<0.000000e+00> : vector<8x384xf32>
    %12 = tpu.matmul %11, %9, %cst_12 {dimension_numbers = #tpu.dot_dimension_numbers<[1], [0], [0], [1], [0, 0, 1, 1], [], []>} : vector<8x4xf32>, vector<4x384xf32>, vector<8x384xf32> -> vector<8x384xf32>
    %13 = arith.addf %3, %12 : vector<8x384xf32>
    %14 = vector.extract_strided_slice %8 {offsets = [0, 1], sizes = [4, 384], strides = [1, 1]} : vector<4x512xf32> to vector<4x384xf32>
    %c1 = arith.constant 1 : index
    %c0_13 = arith.constant 0 : index
    %c0_14 = arith.constant 0 : index
    %15 = vector.load %arg4[%c1, %c0_13, %c0_14] : memref<9x8x4xf32, #tpu.memory_space<vmem>>, vector<1x8x4xf32>
    %16 = vector.shape_cast %15 : vector<1x8x4xf32> to vector<8x4xf32>
    %cst_15 = arith.constant dense<0.000000e+00> : vector<8x384xf32>
    %17 = tpu.matmul %16, %14, %cst_15 {dimension_numbers = #tpu.dot_dimension_numbers<[1], [0], [0], [1], [0, 0, 1, 1], [], []>} : vector<8x4xf32>, vector<4x384xf32>, vector<8x384xf32> -> vector<8x384xf32>
    %18 = arith.addf %13, %17 : vector<8x384xf32>
    %19 = vector.extract_strided_slice %8 {offsets = [0, 2], sizes = [4, 384], strides = [1, 1]} : vector<4x512xf32> to vector<4x384xf32>
    %c2 = arith.constant 2 : index
    %c0_16 = arith.constant 0 : index
    %c0_17 = arith.constant 0 : index
    %20 = vector.load %arg4[%c2, %c0_16, %c0_17] : memref<9x8x4xf32, #tpu.memory_space<vmem>>, vector<1x8x4xf32>
    %21 = vector.shape_cast %20 : vector<1x8x4xf32> to vector<8x4xf32>
    %cst_18 = arith.constant dense<0.000000e+00> : vector<8x384xf32>
    %22 = tpu.matmul %21, %19, %cst_18 {dimension_numbers = #tpu.dot_dimension_numbers<[1], [0], [0], [1], [0, 0, 1, 1], [], []>} : vector<8x4xf32>, vector<4x384xf32>, vector<8x384xf32> -> vector<8x384xf32>
    %23 = arith.addf %18, %22 : vector<8x384xf32>
    %24 = vector.extract_strided_slice %8 {offsets = [0, 18], sizes = [4, 384], strides = [1, 1]} : vector<4x512xf32> to vector<4x384xf32>
    %c3 = arith.constant 3 : index
    %c0_19 = arith.constant 0 : index
    %c0_20 = arith.constant 0 : index
    %25 = vector.load %arg4[%c3, %c0_19, %c0_20] : memref<9x8x4xf32, #tpu.memory_space<vmem>>, vector<1x8x4xf32>
    %26 = vector.shape_cast %25 : vector<1x8x4xf32> to vector<8x4xf32>
    %cst_21 = arith.constant dense<0.000000e+00> : vector<8x384xf32>
    %27 = tpu.matmul %26, %24, %cst_21 {dimension_numbers = #tpu.dot_dimension_numbers<[1], [0], [0], [1], [0, 0, 1, 1], [], []>} : vector<8x4xf32>, vector<4x384xf32>, vector<8x384xf32> -> vector<8x384xf32>
    %28 = arith.addf %23, %27 : vector<8x384xf32>
    %29 = vector.extract_strided_slice %8 {offsets = [0, 19], sizes = [4, 384], strides = [1, 1]} : vector<4x512xf32> to vector<4x384xf32>
    %c4 = arith.constant 4 : index
    %c0_22 = arith.constant 0 : index
    %c0_23 = arith.constant 0 : index
    %30 = vector.load %arg4[%c4, %c0_22, %c0_23] : memref<9x8x4xf32, #tpu.memory_space<vmem>>, vector<1x8x4xf32>
    %31 = vector.shape_cast %30 : vector<1x8x4xf32> to vector<8x4xf32>
    %cst_24 = arith.constant dense<0.000000e+00> : vector<8x384xf32>
    %32 = tpu.matmul %31, %29, %cst_24 {dimension_numbers = #tpu.dot_dimension_numbers<[1], [0], [0], [1], [0, 0, 1, 1], [], []>} : vector<8x4xf32>, vector<4x384xf32>, vector<8x384xf32> -> vector<8x384xf32>
    %33 = arith.addf %28, %32 : vector<8x384xf32>
    %34 = vector.extract_strided_slice %8 {offsets = [0, 20], sizes = [4, 384], strides = [1, 1]} : vector<4x512xf32> to vector<4x384xf32>
    %c5 = arith.constant 5 : index
    %c0_25 = arith.constant 0 : index
    %c0_26 = arith.constant 0 : index
    %35 = vector.load %arg4[%c5, %c0_25, %c0_26] : memref<9x8x4xf32, #tpu.memory_space<vmem>>, vector<1x8x4xf32>
    %36 = vector.shape_cast %35 : vector<1x8x4xf32> to vector<8x4xf32>
    %cst_27 = arith.constant dense<0.000000e+00> : vector<8x384xf32>
    %37 = tpu.matmul %36, %34, %cst_27 {dimension_numbers = #tpu.dot_dimension_numbers<[1], [0], [0], [1], [0, 0, 1, 1], [], []>} : vector<8x4xf32>, vector<4x384xf32>, vector<8x384xf32> -> vector<8x384xf32>
    %38 = arith.addf %33, %37 : vector<8x384xf32>
    %39 = vector.extract_strided_slice %8 {offsets = [0, 36], sizes = [4, 384], strides = [1, 1]} : vector<4x512xf32> to vector<4x384xf32>
    %c6 = arith.constant 6 : index
    %c0_28 = arith.constant 0 : index
    %c0_29 = arith.constant 0 : index
    %40 = vector.load %arg4[%c6, %c0_28, %c0_29] : memref<9x8x4xf32, #tpu.memory_space<vmem>>, vector<1x8x4xf32>
    %41 = vector.shape_cast %40 : vector<1x8x4xf32> to vector<8x4xf32>
    %cst_30 = arith.constant dense<0.000000e+00> : vector<8x384xf32>
    %42 = tpu.matmul %41, %39, %cst_30 {dimension_numbers = #tpu.dot_dimension_numbers<[1], [0], [0], [1], [0, 0, 1, 1], [], []>} : vector<8x4xf32>, vector<4x384xf32>, vector<8x384xf32> -> vector<8x384xf32>
    %43 = arith.addf %38, %42 : vector<8x384xf32>
    %44 = vector.extract_strided_slice %8 {offsets = [0, 37], sizes = [4, 384], strides = [1, 1]} : vector<4x512xf32> to vector<4x384xf32>
    %c7 = arith.constant 7 : index
    %c0_31 = arith.constant 0 : index
    %c0_32 = arith.constant 0 : index
    %45 = vector.load %arg4[%c7, %c0_31, %c0_32] : memref<9x8x4xf32, #tpu.memory_space<vmem>>, vector<1x8x4xf32>
    %46 = vector.shape_cast %45 : vector<1x8x4xf32> to vector<8x4xf32>
    %cst_33 = arith.constant dense<0.000000e+00> : vector<8x384xf32>
    %47 = tpu.matmul %46, %44, %cst_33 {dimension_numbers = #tpu.dot_dimension_numbers<[1], [0], [0], [1], [0, 0, 1, 1], [], []>} : vector<8x4xf32>, vector<4x384xf32>, vector<8x384xf32> -> vector<8x384xf32>
    %48 = arith.addf %43, %47 : vector<8x384xf32>
    %49 = vector.extract_strided_slice %8 {offsets = [0, 38], sizes = [4, 384], strides = [1, 1]} : vector<4x512xf32> to vector<4x384xf32>
    %c8 = arith.constant 8 : index
    %c0_34 = arith.constant 0 : index
    %c0_35 = arith.constant 0 : index
    %50 = vector.load %arg4[%c8, %c0_34, %c0_35] : memref<9x8x4xf32, #tpu.memory_space<vmem>>, vector<1x8x4xf32>
    %51 = vector.shape_cast %50 : vector<1x8x4xf32> to vector<8x4xf32>
    %cst_36 = arith.constant dense<0.000000e+00> : vector<8x384xf32>
    %52 = tpu.matmul %51, %49, %cst_36 {dimension_numbers = #tpu.dot_dimension_numbers<[1], [0], [0], [1], [0, 0, 1, 1], [], []>} : vector<8x4xf32>, vector<4x384xf32>, vector<8x384xf32> -> vector<8x384xf32>
    %53 = arith.addf %48, %52 : vector<8x384xf32>
    %c0_37 = arith.constant 0 : index
    %c0_38 = arith.constant 0 : index
    %c0_39 = arith.constant 0 : index
    %54 = vector.load %arg6[%c0_37, %c0_38, %c0_39] : memref<1x8x384xf32, #tpu.memory_space<vmem>>, vector<1x8x384xf32>
    %55 = vector.shape_cast %54 : vector<1x8x384xf32> to vector<8x384xf32>
    %56 = vector.shape_cast %53 : vector<8x384xf32> to vector<1x8x384xf32>
    tpu.vector_store %arg6[%c0_37, %c0_38, %c0_39], %56 {strides = array<i32>} : memref<1x8x384xf32, #tpu.memory_space<vmem>>, vector<1x8x384xf32>,
    return
  }
  func.func @transform_0(%arg0: i32, %arg1: i32) -> (i32, i32, i32, i32) {
    %c0_i32 = arith.constant 0 : i32
    %c0_i32_0 = arith.constant 0 : i32
    %c0_i32_1 = arith.constant 0 : i32
    return %arg0, %c0_i32, %c0_i32_0, %arg1 : i32, i32, i32, i32
  }
  func.func @transform_1(%arg0: i32, %arg1: i32) -> (i32, i32, i32, i32) {
    %c1_i32 = arith.constant 1 : i32
    %0 = arith.addi %arg1, %c1_i32 : i32
    %c3_i32 = arith.constant 3 : i32
    %1 = arith.muli %0, %c3_i32 : i32
    %c0_i32 = arith.constant 0 : i32
    %c0_i32_0 = arith.constant 0 : i32
    %c0_i32_1 = arith.constant 0 : i32
    return %arg0, %c0_i32, %c0_i32_0, %1 : i32, i32, i32, i32
  }
  func.func @transform_2(%arg0: i32, %arg1: i32) -> (i32, i32, i32) {
    %c0_i32 = arith.constant 0 : i32
    %c0_i32_0 = arith.constant 0 : i32
    %c0_i32_1 = arith.constant 0 : i32
    %c0_i32_2 = arith.constant 0 : i32
    return %c0_i32, %c0_i32_0, %c0_i32_1 : i32, i32, i32
  }
  func.func @transform_3(%arg0: i32, %arg1: i32) -> (i32, i32) {
    %c0_i32 = arith.constant 0 : i32
    %c0_i32_0 = arith.constant 0 : i32
    %c0_i32_1 = arith.constant 0 : i32
    return %c0_i32, %c0_i32_0 : i32, i32
  }
  func.func @transform_4(%arg0: i32, %arg1: i32) -> (i32, i32, i32) {
    %c0_i32 = arith.constant 0 : i32
    %c0_i32_0 = arith.constant 0 : i32
    return %arg0, %c0_i32, %arg1 : i32, i32, i32
  }
}

</mosaic_0001>

<bundles_post_ra>
// kernel: conv2d_forward.1
= control target key start
LH: loop header
LB: loop body
LE: loop exit
PB: predicated region body
PF: predicated region fallthrough
CT: control target
= control target key end

     0   :  { %s2181_s15 = smov 0   ;;  %s2183_s16 = smov 0   ;;  %s2332_s0 = inlined_call_operand.vmem [shape: f32[2,1,4,512], index: 0, kind: input, shape index: {}, may-alias: {0,1}]   ;;  %s2333_s1 = inlined_call_operand.vmem [shape: f32[2,1,4,512], index: 1, kind: input, shape index: {}, may-alias: {0,1}]   ;;  %s2334_s2 = inlined_call_operand.vmem [shape: f32[9,8,4], index: 2, kind: input, shape index: {}]   ;;  %s2335_s3 = inlined_call_operand.vmem [shape: f32[8,1], index: 3, kind: input, shape index: {}]   ;;  %s2336_s4 = inlined_call_operand.vmem [shape: f32[2,8,384], index: 4, kind: output, shape index: {}]  }
   0x1   :  { %s2185_s17 = smov 0  }
   0x2 LB: > { %s26_s18 = sadd.s32 1, %s2139_s16  ;;  %p1920_p0 = scmp.ge.s32.totalorder %s2143_s17, 1  ;;  %s2143_s17 = sphi %s2185_s17, %s14_s17   ;;  %s2139_s16 = sphi %s2183_s16, %s2338_s16   ;;  %s2135_s15 = sphi %s2181_s15, %s2337_s15  }
   0x3   : > { %p28_p1 = scmp.ge.s32.totalorder %s26_s18, 2  ;;  %p214_p2 = scmp.lt.s32.totalorder %s2143_s17, 3 }
   0x5   : > { %s2340_s18 = smov (%p28_p1, %s26_s18), 0  ;;  %p215_p3 = pnand %p1920_p0, %p214_p2 }
   0x6   : > { %p267_p4 = scmp.lt.s32.totalorder (!%p215_p3), %s2135_s15, 1  ;;  %v2145_v0 = vmov (!%p215_p3), 0.0   ;;  %vm2146_vm0 = vmmov (!%p215_p3), 0   ;;  %vm320_vm1 = vcmask (!%p215_p3), 1043456   ;;  %v315_v1 = vld [vmem:[%s2334_s2] sm:$0xff] (!%p215_p3)  ;;  %vm316_vm2 = vcmask (!%p215_p3), 31744  }
   0x7   : > { %218 = sbr.rel (%p215_p3) target bundleno = 414 (0x19e), region = 36  ;;  %2003 = vmatprep.subr.mxu1 (!%p215_p3), %v2145_v0  ;;  %2005 = vmatprep.mubr.msk.f32.mxu1 (!%p215_p3), %vm2146_vm0, %v2145_v0  ;;  %s2147_s29 = smov (!%p215_p3), 127   ;;  %v2154_v6 = vmov (!%p215_p3), 0   ;;  %v302_v7 = vld [vmem:[%s2335_s3] sm:$0xff] (!%p215_p3)  ;;  %vm482_vm3 = vcmask (!%p215_p3), 1039360   ;;  %v1931_v12 = vld [vmem:[%s2334_s2 + $0x8] sm:$0xff] (!%p215_p3) }
   0x8   : > { %391 = vmatprep.mubr.f32.mxu0 (!%p215_p3), %v2145_v0  ;;  %s2148_s30 = smov (!%p215_p3), 126   ;;  %s2149_s5 = smov (!%p215_p3), 110   ;;  %2119 = vset.pattern.permute.xlu0 (!%p215_p3), %v2154_v6  ;;  %vm649_vm4 = vcmask (!%p215_p3), 1031168   ;;  %v1937_v22 = vld [vmem:[%s2334_s2 + $0x10] sm:$0xff] (!%p215_p3)  ;;  %vm816_vm5 = vcmask (!%p215_p3), 900096   ;;  %v1943_v30 = vld [vmem:[%s2334_s2 + $0x18] sm:$0xff] (!%p215_p3) }
   0x9   : > { %s2150_s6 = smov (!%p215_p3), 109   ;;  %s2151_s7 = smov (!%p215_p3), 108   ;;  %vm983_vm6 = vcmask (!%p215_p3), 891904   ;;  %v1949_v38 = vld [vmem:[%s2334_s2 + $0x20] sm:$0xff] (!%p215_p3)  ;;  %vm1150_vm7 = vcmask (!%p215_p3), 883712   ;;  %v1955_v46 = vld [vmem:[%s2334_s2 + $0x28] sm:$0xff] (!%p215_p3) }
   0xa   : > { %s2152_s8 = smov (!%p215_p3), 92   ;;  %s2153_s9 = smov (!%p215_p3), 91   ;;  %vm1317_vm8 = vcmask (!%p215_p3), 752640   ;;  %v1961_v54 = vld [vmem:[%s2334_s2 + $0x30] sm:$0xff] (!%p215_p3)  ;;  %vm1484_vm9 = vcmask (!%p215_p3), 744448   ;;  %v1967_v62 = vld [vmem:[%s2334_s2 + $0x38] sm:$0xff] (!%p215_p3) }
   0xb   : > { %s2155_s10 = smov (!%p215_p3), 90   ;;  %vm1651_vm10 = vcmask (!%p215_p3), 736256  }
   0xe   : > { %s2342_s15 = smov (!%p267_p4, %s2135_s15), 1 }
   0xf   : > { %s1981_s19 = sshll.u32 %s2342_s15, 4 }
  0x10   : > { %s274_s22 = scalar_lea.vmem %s2332_s0, %s1981_s19  ;;  %s1983_s23 = sadd.s32 12, %s1981_s19 }
  0x11   : > { %v309_v2 = vld [vmem:[%s274_s22] sm:$0xff]  ;;  %s289_s28 = scalar_lea.vmem %s2333_s1, %s1983_s23  ;;  %v310_v3 = vld [vmem:[%s274_s22 + $0x8] sm:$0xf] }
  0x12   : > { %474 = vrot.lane.b32.xlu1 %v309_v2, %s2147_s29  ;;  %v314_v4 = vcombine.high %v309_v2, %v309_v2  ;;  %2004 = vmatpush3.msk.msra.mxu1 %vm320_vm1, %v310_v3  ;;  %v311_v5 = vld [vmem:[%s289_s28] sm:$0xf] }
  0x13   : > { %2006 = vmatmul.mubr.msk.f32.vlgmr.msra.gmra.mrb[0].mxu1 %vm316_vm2, %v315_v1  ;;  %2008 = vmatprep.subr.mxu1 %v2145_v0 }
  0x14   : > { %476 = vrot.lane.b32.xlu0 %v314_v4, %s2147_s29  ;;  %1926 = vmatprep.subr.msk.mxu0 %vm320_vm1, %v314_v4 }
  0x15   : > { %1927 = vmatpush1.msk.msra.mxu0 %vm320_vm1, %v309_v2  ;;  %2010 = vmatprep.mubr.msk.f32.mxu1 %vm2146_vm0, %v2145_v0 }
  0x16   : > { %480 = vrot.lane.b32.xlu1 %v311_v5, %s2147_s29  ;;  %1928 = vmatmul.mubr.msk.f32.vlgmr.msra.gmra.mrb[0].mxu0 %vm316_vm2, %v315_v1 }
  0x17   : > { %559 = vmatprep.mubr.f32.mxu0 %v2145_v0 }
  0x18   : > { %478 = vrot.lane.b32.xlu0 %v310_v3, %s2147_s29 }
  0x1a   : > { %645 = vrot.lane.b32.xlu1 %v310_v3, %s2148_s30 }
  0x1c   : > { %643 = vrot.lane.b32.xlu0 %v314_v4, %s2148_s30 }
  0x1e   : > { %647 = vrot.lane.b32.xlu1 %v311_v5, %s2148_s30 }
  0x20   : > { %641 = vrot.lane.b32.xlu0 %v309_v2, %s2148_s30 }
  0x22   : > { %812 = vrot.lane.b32.xlu1 %v310_v3, %s2149_s5 }
  0x24   : > { %810 = vrot.lane.b32.xlu0 %v314_v4, %s2149_s5 }
  0x26   : > { %814 = vrot.lane.b32.xlu1 %v311_v5, %s2149_s5 }
  0x28   : > { %808 = vrot.lane.b32.xlu0 %v309_v2, %s2149_s5 }
  0x2a   : > { %979 = vrot.lane.b32.xlu1 %v310_v3, %s2150_s6 }
  0x2c   : > { %977 = vrot.lane.b32.xlu0 %v314_v4, %s2150_s6 }
  0x2e   : > { %981 = vrot.lane.b32.xlu1 %v311_v5, %s2150_s6 }
  0x30   : > { %975 = vrot.lane.b32.xlu0 %v309_v2, %s2150_s6 }
  0x32   : > { %1146 = vrot.lane.b32.xlu1 %v310_v3, %s2151_s7 }
  0x34   : > { %1144 = vrot.lane.b32.xlu0 %v314_v4, %s2151_s7 }
  0x36   : > { %1148 = vrot.lane.b32.xlu1 %v311_v5, %s2151_s7 }
  0x38   : > { %1142 = vrot.lane.b32.xlu0 %v309_v2, %s2151_s7  ;;  %s2083_s7 = smul.u32 24, %s2342_s15 }
  0x3a   : > { %1313 = vrot.lane.b32.xlu1 %v310_v3, %s2152_s8 }
  0x3c   : > { %1311 = vrot.lane.b32.xlu0 %v314_v4, %s2152_s8 }
  0x3e   : > { %1315 = vrot.lane.b32.xlu1 %v311_v5, %s2152_s8 }
  0x40   : > { %1309 = vrot.lane.b32.xlu0 %v309_v2, %s2152_s8 }
  0x42   : > { %1480 = vrot.lane.b32.xlu1 %v310_v3, %s2153_s9 }
  0x44   : > { %1478 = vrot.lane.b32.xlu0 %v314_v4, %s2153_s9 }
  0x46   : > { %1482 = vrot.lane.b32.xlu1 %v311_v5, %s2153_s9 }
  0x48   : > { %1476 = vrot.lane.b32.xlu0 %v309_v2, %s2153_s9 }
  0x4a   : > { %1647 = vrot.lane.b32.xlu1 %v310_v3, %s2155_s10 }
  0x4c   : > { %1645 = vrot.lane.b32.xlu0 %v314_v4, %s2155_s10 }
  0x4e   : > { %1649 = vrot.lane.b32.xlu1 %v311_v5, %s2155_s10 }
  0x50   : > { %1643 = vrot.lane.b32.xlu0 %v309_v2, %s2155_s10  ;;  %s300_s10 = scalar_lea.vmem %s2336_s4, %s2083_s7 }
  0x54   : > { %305 = vperm.xlu0 %2119, %v302_v7   ;;  %v1973_v7 = vld [vmem:[%s2334_s2 + $0x40] sm:$0xff] }
  0x84   : > { %v475_v8 = vpop.permute.xlu1 %474 }
  0x86   : > { %v477_v9 = vpop.permute.xlu0 %476 }
  0x87   : > { %v483_v15 = vsel %vm482_vm3, %v475_v8, %v477_v9 }
  0x88   : > { %v481_v10 = vpop.permute.xlu1 %480 }
  0x8a   : > { %v479_v11 = vpop.permute.xlu0 %478 }
  0x8b   : > { %v484_v13 = vsel %vm482_vm3, %v477_v9, %v479_v11  ;;  %v485_v14 = vsel %vm482_vm3, %v479_v11, %v481_v10 }
  0x8c   : > { %v646_v16 = vpop.permute.xlu1 %645  ;;  %1932 = vmatprep.subr.msk.mxu0 %vm320_vm1, %v484_v13  ;;  %2009 = vmatpush3.msk.msra.mxu1 %vm320_vm1, %v485_v14 }
  0x8d   : > { %1933 = vmatpush1.msk.msra.mxu0 %vm320_vm1, %v483_v15  ;;  %2011 = vmatmul.mubr.msk.f32.vlgmr.msra.gmra.mrb[0].mxu1 %vm316_vm2, %v1931_v12 }
  0x8e   : > { %v644_v17 = vpop.permute.xlu0 %643  ;;  %1934 = vmatmul.mubr.msk.f32.vlgmr.msra.gmra.mrb[0].mxu0 %vm316_vm2, %v1931_v12  ;;  %2013 = vmatprep.subr.mxu1 %v2145_v0 }
  0x8f   : > { %v651_v18 = vsel %vm649_vm4, %v644_v17, %v646_v16  ;;  %2015 = vmatprep.mubr.msk.f32.mxu1 %vm2146_vm0, %v2145_v0  ;;  %726 = vmatprep.mubr.f32.mxu0 %v2145_v0 }
  0x90   : > { %v648_v19 = vpop.permute.xlu1 %647  ;;  %1938 = vmatprep.subr.msk.mxu0 %vm320_vm1, %v651_v18 }
  0x91   : > { %v652_v20 = vsel %vm649_vm4, %v646_v16, %v648_v19 }
  0x92   : > { %2014 = vmatpush3.msk.msra.mxu1 %vm320_vm1, %v652_v20  ;;  %v642_v21 = vpop.permute.xlu0 %641 }
  0x93   : > { %v650_v23 = vsel %vm649_vm4, %v642_v21, %v644_v17  ;;  %2018 = vmatprep.subr.mxu1 %v2145_v0 }
  0x94   : > { %v813_v24 = vpop.permute.xlu1 %812  ;;  %1939 = vmatpush1.msk.msra.mxu0 %vm320_vm1, %v650_v23 }
  0x95   : > { %2016 = vmatmul.mubr.msk.f32.vlgmr.msra.gmra.mrb[0].mxu1 %vm316_vm2, %v1937_v22 }
  0x96   : > { %v811_v25 = vpop.permute.xlu0 %810  ;;  %1940 = vmatmul.mubr.msk.f32.vlgmr.msra.gmra.mrb[0].mxu0 %vm316_vm2, %v1937_v22  ;;  %2020 = vmatprep.mubr.msk.f32.mxu1 %vm2146_vm0, %v2145_v0 }
  0x97   : > { %v818_v26 = vsel %vm816_vm5, %v811_v25, %v813_v24  ;;  %893 = vmatprep.mubr.f32.mxu0 %v2145_v0 }
  0x98   : > { %v815_v27 = vpop.permute.xlu1 %814  ;;  %1944 = vmatprep.subr.msk.mxu0 %vm320_vm1, %v818_v26 }
  0x99   : > { %v819_v28 = vsel %vm816_vm5, %v813_v24, %v815_v27 }
  0x9a   : > { %2019 = vmatpush3.msk.msra.mxu1 %vm320_vm1, %v819_v28  ;;  %v809_v29 = vpop.permute.xlu0 %808 }
  0x9b   : > { %v817_v31 = vsel %vm816_vm5, %v809_v29, %v811_v25  ;;  %2023 = vmatprep.subr.mxu1 %v2145_v0 }
  0x9c   : > { %v980_v32 = vpop.permute.xlu1 %979  ;;  %1945 = vmatpush1.msk.msra.mxu0 %vm320_vm1, %v817_v31 }
  0x9d   : > { %2021 = vmatmul.mubr.msk.f32.vlgmr.msra.gmra.mrb[0].mxu1 %vm316_vm2, %v1943_v30 }
  0x9e   : > { %v978_v33 = vpop.permute.xlu0 %977  ;;  %1946 = vmatmul.mubr.msk.f32.vlgmr.msra.gmra.mrb[0].mxu0 %vm316_vm2, %v1943_v30  ;;  %2025 = vmatprep.mubr.msk.f32.mxu1 %vm2146_vm0, %v2145_v0 }
  0x9f   : > { %v985_v34 = vsel %vm983_vm6, %v978_v33, %v980_v32  ;;  %1060 = vmatprep.mubr.f32.mxu0 %v2145_v0 }
  0xa0   : > { %v982_v35 = vpop.permute.xlu1 %981  ;;  %1950 = vmatprep.subr.msk.mxu0 %vm320_vm1, %v985_v34 }
  0xa1   : > { %v986_v36 = vsel %vm983_vm6, %v980_v32, %v982_v35 }
  0xa2   : > { %2024 = vmatpush3.msk.msra.mxu1 %vm320_vm1, %v986_v36  ;;  %v976_v37 = vpop.permute.xlu0 %975 }
  0xa3   : > { %v984_v39 = vsel %vm983_vm6, %v976_v37, %v978_v33  ;;  %2028 = vmatprep.subr.mxu1 %v2145_v0 }
  0xa4   : > { %v1147_v40 = vpop.permute.xlu1 %1146  ;;  %1951 = vmatpush1.msk.msra.mxu0 %vm320_vm1, %v984_v39 }
  0xa5   : > { %2026 = vmatmul.mubr.msk.f32.vlgmr.msra.gmra.mrb[0].mxu1 %vm316_vm2, %v1949_v38 }
  0xa6   : > { %v1145_v41 = vpop.permute.xlu0 %1144  ;;  %1952 = vmatmul.mubr.msk.f32.vlgmr.msra.gmra.mrb[0].mxu0 %vm316_vm2, %v1949_v38  ;;  %2030 = vmatprep.mubr.msk.f32.mxu1 %vm2146_vm0, %v2145_v0 }
  0xa7   : > { %v1152_v42 = vsel %vm1150_vm7, %v1145_v41, %v1147_v40  ;;  %1227 = vmatprep.mubr.f32.mxu0 %v2145_v0 }
  0xa8   : > { %v1149_v43 = vpop.permute.xlu1 %1148  ;;  %1956 = vmatprep.subr.msk.mxu0 %vm320_vm1, %v1152_v42 }
  0xa9   : > { %v1153_v44 = vsel %vm1150_vm7, %v1147_v40, %v1149_v43 }
  0xaa   : > { %2029 = vmatpush3.msk.msra.mxu1 %vm320_vm1, %v1153_v44  ;;  %v1143_v45 = vpop.permute.xlu0 %1142 }
  0xab   : > { %v1151_v47 = vsel %vm1150_vm7, %v1143_v45, %v1145_v41  ;;  %2033 = vmatprep.subr.mxu1 %v2145_v0 }
  0xac   : > { %v1314_v48 = vpop.permute.xlu1 %1313  ;;  %1957 = vmatpush1.msk.msra.mxu0 %vm320_vm1, %v1151_v47 }
  0xad   : > { %2031 = vmatmul.mubr.msk.f32.vlgmr.msra.gmra.mrb[0].mxu1 %vm316_vm2, %v1955_v46 }
  0xae   : > { %v1312_v49 = vpop.permute.xlu0 %1311  ;;  %1958 = vmatmul.mubr.msk.f32.vlgmr.msra.gmra.mrb[0].mxu0 %vm316_vm2, %v1955_v46  ;;  %2035 = vmatprep.mubr.msk.f32.mxu1 %vm2146_vm0, %v2145_v0 }
  0xaf   : > { %v1319_v50 = vsel %vm1317_vm8, %v1312_v49, %v1314_v48  ;;  %1394 = vmatprep.mubr.f32.mxu0 %v2145_v0 }
  0xb0   : > { %v1316_v51 = vpop.permute.xlu1 %1315  ;;  %1962 = vmatprep.subr.msk.mxu0 %vm320_vm1, %v1319_v50 }
  0xb1   : > { %v1320_v52 = vsel %vm1317_vm8, %v1314_v48, %v1316_v51 }
  0xb2   : > { %2034 = vmatpush3.msk.msra.mxu1 %vm320_vm1, %v1320_v52  ;;  %v1310_v53 = vpop.permute.xlu0 %1309 }
  0xb3   : > { %v1318_v55 = vsel %vm1317_vm8, %v1310_v53, %v1312_v49  ;;  %2038 = vmatprep.subr.mxu1 %v2145_v0 }
  0xb4   : > { %v1481_v56 = vpop.permute.xlu1 %1480  ;;  %1963 = vmatpush1.msk.msra.mxu0 %vm320_vm1, %v1318_v55 }
  0xb5   : > { %2036 = vmatmul.mubr.msk.f32.vlgmr.msra.gmra.mrb[0].mxu1 %vm316_vm2, %v1961_v54 }
  0xb6   : > { %v1479_v57 = vpop.permute.xlu0 %1478  ;;  %1964 = vmatmul.mubr.msk.f32.vlgmr.msra.gmra.mrb[0].mxu0 %vm316_vm2, %v1961_v54  ;;  %2040 = vmatprep.mubr.msk.f32.mxu1 %vm2146_vm0, %v2145_v0 }
  0xb7   : > { %v1486_v58 = vsel %vm1484_vm9, %v1479_v57, %v1481_v56  ;;  %1561 = vmatprep.mubr.f32.mxu0 %v2145_v0 }
  0xb8   : > { %v1483_v59 = vpop.permute.xlu1 %1482  ;;  %1968 = vmatprep.subr.msk.mxu0 %vm320_vm1, %v1486_v58 }
  0xb9   : > { %v1487_v60 = vsel %vm1484_vm9, %v1481_v56, %v1483_v59 }
  0xba   : > { %2039 = vmatpush3.msk.msra.mxu1 %vm320_vm1, %v1487_v60  ;;  %v1477_v61 = vpop.permute.xlu0 %1476 }
  0xbb   : > { %v1485_v63 = vsel %vm1484_vm9, %v1477_v61, %v1479_v57  ;;  %2043 = vmatprep.subr.mxu1 %v2145_v0 }
  0xbc   : > { %v1648_v1 = vpop.permute.xlu1 %1647  ;;  %1969 = vmatpush1.msk.msra.mxu0 %vm320_vm1, %v1485_v63 }
  0xbd   : > { %2041 = vmatmul.mubr.msk.f32.vlgmr.msra.gmra.mrb[0].mxu1 %vm316_vm2, %v1967_v62 }
  0xbe   : > { %v1646_v2 = vpop.permute.xlu0 %1645  ;;  %1970 = vmatmul.mubr.msk.f32.vlgmr.msra.gmra.mrb[0].mxu0 %vm316_vm2, %v1967_v62  ;;  %2045 = vmatprep.mubr.msk.f32.mxu1 %vm2146_vm0, %v2145_v0 }
  0xbf   : > { %v1653_v3 = vsel %vm1651_vm10, %v1646_v2, %v1648_v1  ;;  %1728 = vmatprep.mubr.f32.mxu0 %v2145_v0 }
  0xc0   : > { %v1650_v4 = vpop.permute.xlu1 %1649  ;;  %1974 = vmatprep.subr.msk.mxu0 %vm320_vm1, %v1653_v3 }
  0xc1   : > { %v1654_v5 = vsel %vm1651_vm10, %v1648_v1, %v1650_v4 }
  0xc2   : > { %2044 = vmatpush3.msk.msra.mxu1 %vm320_vm1, %v1654_v5  ;;  %v1644_v6 = vpop.permute.xlu0 %1643 }
  0xc3   : > { %v1652_v8 = vsel %vm1651_vm10, %v1644_v6, %v1646_v2 }
  0xc4   : > { %1975 = vmatpush1.msk.msra.mxu0 %vm320_vm1, %v1652_v8 }
  0xc5   : > { %2046 = vmatmul.mubr.msk.f32.vlgmr.msra.gmra.mrb[0].mxu1 %vm316_vm2, %v1973_v7 }
  0xc6   : > { %1976 = vmatmul.mubr.msk.f32.vlgmr.msra.gmra.mrb[0].mxu0 %vm316_vm2, %v1973_v7 }
  0xd3   : > { %v306_v0 = vpop.permute.xlu0 %305 }
 0x198   : > { %v1801_v9 = vpop.f32.mrb[0].mxu1 }
 0x199   : > { %v2050_v10 = vadd.f32 %v1801_v9, %v306_v0  ;;  %v1730_v11 = vpop.f32.mrb[0].mxu0  ;;  %v2047_v12 = vpop.f32.mrb[1].mxu1 }
 0x19a   : > { %v2048_v13 = vadd.f32 %v1730_v11, %v306_v0  ;;  %v1732_v14 = vpop.f32.mrb[1].mxu0 }
 0x19b   : > { %1810 = vst [vmem:[%s300_s10 + $0x10] sm:$0xff] %v2050_v10  ;;  %v2049_v15 = vadd.f32 %v1732_v14, %v306_v0 }
 0x19c   : > { %1808 = vst [vmem:[%s300_s10] sm:$0xff] %v2048_v13 }
 0x19d   : > { %1809 = vst [vmem:[%s300_s10 + $0x8] sm:$0xff] %v2049_v15 }
 0x19e PF: > { %s14_s17 = sadd.s32 1, %s2143_s17   ;;  %s2337_s15 = smov %s2139_s16 }
 0x19f   : > { %p11_p5 = scmp.ge.s32.totalorder %s14_s17, 4   ;;  %s2338_s16 = smov %s2340_s18 }
 0x1a1   :  { %13 = sbr.rel (!%p11_p5) target bundleno = 2 (0x2), region = 77 }

</bundles_post_ra>
